<compile_context>
chip_gen: v5e
topology: v5e:2x2
jax: 0.10.0
libtpu: 0.0.40
codegen_flags: <defaults>
</compile_context>

<pallas_src>
from functools import partial

import jax
import jax.numpy as jnp
from jax.experimental import pallas as pl
from jax.experimental.pallas import tpu as pltpu  # noqa: F401  (no scratch/grid needed here)

# ----------------------------- config (small synthetic sizes) -----------------------------
D          = 128   # feature_dim (real CLIP ViT-B/16 would be 512)
B          = 2     # image batch
T_TEXT     = 4     # number of text prompts (classes seen)
N_PROTO    = 4     # number of image prototypes
N_PROJ     = 2     # len(projs_img) == len(projs_text) (tasks seen so far)
CTX_LEN    = 6     # 2 tasks * context_prompt_length_per_task(=3)
IMG_C, IMG_H, IMG_W = 3, 16, 16
TOK_LEN    = 8
VOCAB      = 100
SEQ        = 1 + T_TEXT + N_PROTO + CTX_LEN   # transformer sequence length (15)


# ----------------------------- fused forward kernel ---------------------------------------
def fused_forward_kernel(rows_ref, w_ref, vecs_ref, mask_ref,
                         img_out_ref, txt_out_ref, proto_out_ref,
                         *, n_img, n_txt, n_proto, n_ctx, s_real, s_pad, d):
    n_ip = n_img + n_proto

    rows = rows_ref[...]                                 # (R_pad, D) f32: [img|proto|txt|ctx]
    rows_bf = rows.astype(jnp.bfloat16)

    # static lane-aligned views into the packed bf16 weight slab (zero cost)
    w_proj = w_ref[:, 0:2 * d]                           # (D, 2D)  [wpi | wpt]
    w_qkv  = w_ref[:, 2 * d:5 * d]                       # (D, 3D)  [wq/sqrt(dk) | wk | wv]
    w_o    = w_ref[:, 5 * d:6 * d]                       # (D, D)

    bpi  = vecs_ref[0:1, :]                              # (1, D) f32
    bpt  = vecs_ref[1:2, :]
    g    = vecs_ref[2:3, :]
    beta = vecs_ref[3:4, :]

    # ---- both projection lists in ONE MXU pass (weights pre-summed over the ModuleList) --
    acc = jnp.dot(rows_bf, w_proj, preferred_element_type=jnp.float32)   # (R_pad, 2D)
    ip_acc  = acc[0:n_ip, 0:d] + bpi                     # img + prototype rows, img-proj
    txt_acc = acc[n_ip:n_ip + n_txt, d:2 * d] + bpt      # text rows, text-proj

    def l2norm(x):
        # F.normalize: x / max(||x||, 1e-12)  ==  x * rsqrt(max(||x||^2, 1e-24))
        ss = jnp.sum(x * x, axis=-1, keepdims=True)
        return x * jax.lax.rsqrt(jnp.maximum(ss, 1e-24))

    ip_feat  = l2norm(ip_acc)                            # (B+P, D)
    txt_feat = l2norm(txt_acc)                           # (T, D)
    img_feat   = ip_feat[0:n_img]                        # (B, D)
    proto_feat = ip_feat[n_img:n_ip]                     # (P, D)
    ctx = rows[n_ip + n_txt:n_ip + n_txt + n_ctx, :]     # (CTX, D), not projected

    # ---- assemble fused sequence as a (B*S_pad, D) VALUE (no scratch round-trip) ---------
    shared_parts = [txt_feat, proto_feat, ctx]
    if s_pad > s_real:
        shared_parts.append(jnp.zeros((s_pad - s_real, d), jnp.float32))
    shared = jnp.concatenate(shared_parts, axis=0)       # (S_pad - 1, D), batch-shared
    pieces = []
    for i in range(n_img):
        pieces.append(img_feat[i:i + 1])                 # per-batch image token
        pieces.append(shared)
    f2 = jnp.concatenate(pieces, axis=0)                 # (B*S_pad, D) f32

    # ---- fused QKV + flattened block-diagonal single-head attention ----------------------
    qkv = jnp.dot(f2.astype(jnp.bfloat16), w_qkv,
                  preferred_element_type=jnp.float32)    # (B*S_pad, 3D)
    q = qkv[:, 0:d].astype(jnp.bfloat16)
    k = qkv[:, d:2 * d].astype(jnp.bfloat16)
    v = qkv[:, 2 * d:3 * d].astype(jnp.bfloat16)

    logits = jax.lax.dot_general(q, k, (((1,), (1,)), ((), ())),
                                 preferred_element_type=jnp.float32)     # (B*S_pad, B*S_pad)
    logits = logits + mask_ref[...]                      # block-diag + padded-key mask

    m = jnp.max(logits, axis=-1, keepdims=True)
    p = jnp.exp(logits - m)
    attn = p * pl.reciprocal(jnp.sum(p, axis=-1, keepdims=True), approx=True)

    ctx_out = jnp.dot(attn.astype(jnp.bfloat16), v,
                      preferred_element_type=jnp.float32)                # (B*S_pad, D)
    out = jnp.dot(ctx_out.astype(jnp.bfloat16), w_o,
                  preferred_element_type=jnp.float32)
    out = out + f2                                       # residual (f32)

    # LayerNorm (eps=1e-6), f32 math
    mu  = jnp.mean(out, axis=-1, keepdims=True)
    var = jnp.mean((out - mu) * (out - mu), axis=-1, keepdims=True)
    y = (out - mu) * jax.lax.rsqrt(var + 1e-6)
    y = y * g + beta                                     # (B*S_pad, D)

    # ---- emit only what the caller consumes (fused post-processing) ----------------------
    img_out_ref[...] = jnp.concatenate(
        [y[i * s_pad:i * s_pad + 1] for i in range(n_img)], axis=0)      # (B, D)

    inv_b = jnp.float32(1.0 / n_img)
    txt_sum   = y[1:1 + n_txt]
    proto_sum = y[1 + n_txt:1 + n_txt + n_proto]
    for i in range(1, n_img):
        base = i * s_pad
        txt_sum   = txt_sum   + y[base + 1:base + 1 + n_txt]
        proto_sum = proto_sum + y[base + 1 + n_txt:base + 1 + n_txt + n_proto]
    txt_out_ref[...]   = txt_sum * inv_b                 # mean over batch, (T, D)
    proto_out_ref[...] = proto_sum * inv_b               # mean over batch, (P, D)


def fused_forward(rows, w_packed, vecs, attn_mask, *, n_img, n_txt, n_proto, n_ctx):
    d = vecs.shape[-1]
    s_real = 1 + n_txt + n_proto + n_ctx
    s_pad = ((s_real + 7) // 8) * 8                      # sublane-align the sequence length
    assert attn_mask.shape == (n_img * s_pad, n_img * s_pad)

    kernel = partial(fused_forward_kernel, n_img=n_img, n_txt=n_txt, n_proto=n_proto,
                     n_ctx=n_ctx, s_real=s_real, s_pad=s_pad, d=d)
    # Whole problem (< 0.5 MiB) fits in VMEM on v5e/v6e/v7x -> one invocation, no grid,
    # no BlockSpecs, no scratch.
    return pl.pallas_call(
        kernel,
        out_shape=(jax.ShapeDtypeStruct((n_img, d), jnp.float32),
                   jax.ShapeDtypeStruct((n_txt, d), jnp.float32),
                   jax.ShapeDtypeStruct((n_proto, d), jnp.float32)),
    )(rows, w_packed, vecs, attn_mask)


# ----------------------------- parameter init (deterministic, synthetic) ------------------
def init_params(key):
    ks = jax.random.split(key, 16)
    s = 0.02
    params = {
        # CLIP backbone stand-ins (TODO(synk): real ViT-B/16 not translatable here)
        "img_enc_w": s * jax.random.normal(ks[0], (IMG_C * IMG_H * IMG_W, D), jnp.float32),
        "img_enc_b": jnp.zeros((D,), jnp.float32),
        "tok_emb":   s * jax.random.normal(ks[1], (VOCAB, D), jnp.float32),
        "txt_enc_w": s * jax.random.normal(ks[2], (D, D), jnp.float32),
        "txt_enc_b": jnp.zeros((D,), jnp.float32),
        # projection lists (ModuleList of Linear(D, D)), torch layout (out, in)
        "projs_img_w":  s * jax.random.normal(ks[3], (N_PROJ, D, D), jnp.float32),
        "projs_img_b":  s * jax.random.normal(ks[4], (N_PROJ, D), jnp.float32),
        "projs_text_w": s * jax.random.normal(ks[5], (N_PROJ, D, D), jnp.float32),
        "projs_text_b": s * jax.random.normal(ks[6], (N_PROJ, D), jnp.float32),
        # prototypes & context prompts
        "img_prototypes":  s * jax.random.normal(ks[7], (N_PROTO, D), jnp.float32),
        "context_prompts": jax.random.normal(ks[8], (CTX_LEN, D), jnp.float32),
        # sel_attn = MultiHeadAttention(1, D, D, D)
        "wq":   s * jax.random.normal(ks[9],  (D, D), jnp.float32),
        "wk":   s * jax.random.normal(ks[10], (D, D), jnp.float32),
        "wv":   s * jax.random.normal(ks[11], (D, D), jnp.float32),
        "wo":   s * jax.random.normal(ks[12], (D, D), jnp.float32),
        "ln_g": jnp.ones((D,), jnp.float32),
        "ln_b": jnp.zeros((D,), jnp.float32),
        # CLIP logit_scale = ln(1/0.07)
        "logit_scale": jnp.array(jnp.log(1.0 / 0.07), jnp.float32),
    }
    return params


# ------------------- one-time parameter folding (hoisted out of the forward) --------------
def fold_params(params, *, batch, n_txt):
    d = params["ln_g"].shape[0]
    n_proto = params["img_prototypes"].shape[0]
    n_ctx = params["context_prompts"].shape[0]
    s_real = 1 + n_txt + n_proto + n_ctx
    s_pad = ((s_real + 7) // 8) * 8

    # linearity: sum_p(x @ W_p^T + b_p) == x @ (sum_p W_p)^T + sum_p b_p
    wpi = params["projs_img_w"].sum(0).T                         # (D, D)
    wpt = params["projs_text_w"].sum(0).T                        # (D, D)
    scale = 1.0 / jnp.sqrt(jnp.float32(d))                       # temperature = d_k**0.5
    wqkv = jnp.concatenate([params["wq"].T * scale, params["wk"].T, params["wv"].T],
                           axis=1)                               # (D, 3D)
    wo = params["wo"].T                                          # (D, D)
    w_packed = jnp.concatenate([wpi, wpt, wqkv, wo],
                               axis=1).astype(jnp.bfloat16)      # (D, 6D), one DMA

    vecs = jnp.stack([params["projs_img_b"].sum(0), params["projs_text_b"].sum(0),
                      params["ln_g"], params["ln_b"]],
                     axis=0).astype(jnp.float32)                 # (4, D), one DMA

    # block-diagonal (per-batch) + padded-key additive attention mask (constant)
    idx = jnp.arange(batch * s_pad)
    blk = idx // s_pad
    pos = idx % s_pad
    allowed = (blk[:, None] == blk[None, :]) & (pos[None, :] < s_real)
    attn_mask = jnp.where(allowed, 0.0, -1e30).astype(jnp.float32)

    return {
        "img_enc_w": params["img_enc_w"], "img_enc_b": params["img_enc_b"],
        "tok_emb": params["tok_emb"],
        "txt_enc_w": params["txt_enc_w"], "txt_enc_b": params["txt_enc_b"],
        "img_prototypes": params["img_prototypes"],
        "context_prompts": params["context_prompts"],
        "w_packed": w_packed, "vecs": vecs, "attn_mask": attn_mask,
        "logit_scale_exp": jnp.exp(params["logit_scale"]),
    }


# ----------------------------- forward -----------------------------------------------------
@jax.jit
def proof_net_forward(folded, image, text_tokens):
    bsz = image.shape[0]

    # --- CLIP backbone stand-ins (plain JAX glue) ---
    # TODO(synk): real open_clip ViT-B/16 encode_image / encode_text not translatable here.
    basic_img = (image.reshape(bsz, -1).astype(jnp.float32) @ folded["img_enc_w"]
                 + folded["img_enc_b"])
    tok = folded["tok_emb"][text_tokens]                         # (T, TOK_LEN, D)
    basic_txt = tok.mean(axis=1) @ folded["txt_enc_w"] + folded["txt_enc_b"]

    n_proto = folded["img_prototypes"].shape[0]
    n_txt = basic_txt.shape[0]
    n_ctx = folded["context_prompts"].shape[0]

    # single packed per-call row slab: [img | proto | txt | ctx] (+ sublane pad)
    rows = jnp.concatenate([basic_img, folded["img_prototypes"], basic_txt,
                            folded["context_prompts"]], axis=0)
    n_rows = rows.shape[0]
    n_rows_pad = ((n_rows + 7) // 8) * 8
    if n_rows_pad > n_rows:
        rows = jnp.concatenate(
            [rows, jnp.zeros((n_rows_pad - n_rows, rows.shape[1]), rows.dtype)], axis=0)

    # --- single fused Pallas kernel (emits exactly the consumed features) ---
    image_features, text_features, prototype_features = fused_forward(
        rows, folded["w_packed"], folded["vecs"], folded["attn_mask"],
        n_img=bsz, n_txt=n_txt, n_proto=n_proto, n_ctx=n_ctx)

    return image_features, text_features, folded["logit_scale_exp"], prototype_features


# ----------------------------- main --------------------------------------------------------
if __name__ == "__main__":
    key = jax.random.PRNGKey(0)
    pkey, ikey, tkey = jax.random.split(key, 3)

    params = init_params(pkey)
    folded = fold_params(params, batch=B, n_txt=T_TEXT)   # one-time preprocessing
    image = jax.random.normal(ikey, (B, IMG_C, IMG_H, IMG_W), jnp.float32)   # NCHW
    text_tokens = jax.random.randint(tkey, (T_TEXT, TOK_LEN), 0, VOCAB, jnp.int32)

    img_f, txt_f, scale, proto_f = proof_net_forward(folded, image, text_tokens)
    jax.block_until_ready((img_f, txt_f, scale, proto_f))

    assert img_f.shape == (B, D)
    assert txt_f.shape == (T_TEXT, D)
    assert proto_f.shape == (N_PROTO, D)
    assert scale.shape == ()
    assert jnp.all(jnp.isfinite(img_f)) and jnp.all(jnp.isfinite(txt_f)) \
        and jnp.all(jnp.isfinite(proto_f))

    print("KERNEL_OK")
</pallas_src>

<mosaic_0001>
module attributes {stable_mosaic.version = 11 : i64} {
  func.func @fused_forward_kernel(%arg0: memref<16x128xf32, #tpu.memory_space<vmem>>, %arg1: memref<128x768xbf16, #tpu.memory_space<vmem>>, %arg2: memref<4x128xf32, #tpu.memory_space<vmem>>, %arg3: memref<32x32xf32, #tpu.memory_space<vmem>>, %arg4: memref<2x128xf32, #tpu.memory_space<vmem>>, %arg5: memref<4x128xf32, #tpu.memory_space<vmem>>, %arg6: memref<4x128xf32, #tpu.memory_space<vmem>>) attributes {dimension_semantics = [], scalar_prefetch = 0 : i64, scratch_operands = 0 : i64, tpu.core_type = #tpu.core_type<tc>} {
    %c0 = arith.constant 0 : index
    %c0_0 = arith.constant 0 : index
    %0 = vector.load %arg0[%c0, %c0_0] : memref<16x128xf32, #tpu.memory_space<vmem>>, vector<16x128xf32>
    %1 = arith.truncf %0 : vector<16x128xf32> to vector<16x128xbf16>
    %c0_1 = arith.constant 0 : index
    %c0_2 = arith.constant 0 : index
    %2 = vector.load %arg1[%c0_1, %c0_2] : memref<128x768xbf16, #tpu.memory_space<vmem>>, vector<128x256xbf16>
    %c0_3 = arith.constant 0 : index
    %c256 = arith.constant 256 : index
    %3 = vector.load %arg1[%c0_3, %c256] : memref<128x768xbf16, #tpu.memory_space<vmem>>, vector<128x384xbf16>
    %c0_4 = arith.constant 0 : index
    %c640 = arith.constant 640 : index
    %4 = vector.load %arg1[%c0_4, %c640] : memref<128x768xbf16, #tpu.memory_space<vmem>>, vector<128x128xbf16>
    %c0_5 = arith.constant 0 : index
    %c0_6 = arith.constant 0 : index
    %5 = vector.load %arg2[%c0_5, %c0_6] : memref<4x128xf32, #tpu.memory_space<vmem>>, vector<1x128xf32>
    %c1 = arith.constant 1 : index
    %c0_7 = arith.constant 0 : index
    %6 = vector.load %arg2[%c1, %c0_7] : memref<4x128xf32, #tpu.memory_space<vmem>>, vector<1x128xf32>
    %c2 = arith.constant 2 : index
    %c0_8 = arith.constant 0 : index
    %7 = vector.load %arg2[%c2, %c0_8] : memref<4x128xf32, #tpu.memory_space<vmem>>, vector<1x128xf32>
    %c3 = arith.constant 3 : index
    %c0_9 = arith.constant 0 : index
    %8 = vector.load %arg2[%c3, %c0_9] : memref<4x128xf32, #tpu.memory_space<vmem>>, vector<1x128xf32>
    %cst = arith.constant dense<0.000000e+00> : vector<16x256xf32>
    %9 = tpu.matmul %1, %2, %cst {dimension_numbers = #tpu.dot_dimension_numbers<[1], [0], [0], [1], [0, 0, 1, 1], [], []>} : vector<16x128xbf16>, vector<128x256xbf16>, vector<16x256xf32> -> vector<16x256xf32>
    %10 = vector.extract_strided_slice %9 {offsets = [0, 0], sizes = [6, 128], strides = [1, 1]} : vector<16x256xf32> to vector<6x128xf32>
    %11 = vector.broadcast %5 : vector<1x128xf32> to vector<6x128xf32>
    %12 = arith.addf %10, %11 : vector<6x128xf32>
    %13 = vector.extract_strided_slice %9 {offsets = [6, 128], sizes = [4, 128], strides = [1, 1]} : vector<16x256xf32> to vector<4x128xf32>
    %14 = vector.broadcast %6 : vector<1x128xf32> to vector<4x128xf32>
    %15 = arith.addf %13, %14 : vector<4x128xf32>
    %16 = arith.mulf %12, %12 : vector<6x128xf32>
    %cst_10 = arith.constant dense<0.000000e+00> : vector<6xf32>
    %17 = vector.multi_reduction <add>, %16, %cst_10 [1] : vector<6x128xf32> to vector<6xf32>
    %18 = vector.shape_cast %17 : vector<6xf32> to vector<6x1xf32>
    %cst_11 = arith.constant 1.000000e-24 : f32
    %19 = vector.broadcast %cst_11 : f32 to vector<6x1xf32>
    %20 = arith.maximumf %18, %19 : vector<6x1xf32>
    %21 = math.rsqrt %20 : vector<6x1xf32>
    %22 = vector.broadcast %21 : vector<6x1xf32> to vector<6x128xf32>
    %23 = arith.mulf %12, %22 : vector<6x128xf32>
    %24 = arith.mulf %15, %15 : vector<4x128xf32>
    %cst_12 = arith.constant dense<0.000000e+00> : vector<4xf32>
    %25 = vector.multi_reduction <add>, %24, %cst_12 [1] : vector<4x128xf32> to vector<4xf32>
    %26 = vector.shape_cast %25 : vector<4xf32> to vector<4x1xf32>
    %cst_13 = arith.constant 1.000000e-24 : f32
    %27 = vector.broadcast %cst_13 : f32 to vector<4x1xf32>
    %28 = arith.maximumf %26, %27 : vector<4x1xf32>
    %29 = math.rsqrt %28 : vector<4x1xf32>
    %30 = vector.broadcast %29 : vector<4x1xf32> to vector<4x128xf32>
    %31 = arith.mulf %15, %30 : vector<4x128xf32>
    %32 = vector.extract_strided_slice %23 {offsets = [0, 0], sizes = [2, 128], strides = [1, 1]} : vector<6x128xf32> to vector<2x128xf32>
    %33 = vector.extract_strided_slice %23 {offsets = [2, 0], sizes = [4, 128], strides = [1, 1]} : vector<6x128xf32> to vector<4x128xf32>
    %34 = vector.extract_strided_slice %0 {offsets = [10, 0], sizes = [6, 128], strides = [1, 1]} : vector<16x128xf32> to vector<6x128xf32>
    %cst_14 = arith.constant 0.000000e+00 : f32
    %35 = vector.broadcast %cst_14 : f32 to vector<1x128xf32>
    %36 = tpu.concatenate %31, %33, %34, %35 in 0 : vector<4x128xf32>, vector<4x128xf32>, vector<6x128xf32>, vector<1x128xf32> -> vector<15x128xf32>
    %37 = vector.extract_strided_slice %32 {offsets = [0, 0], sizes = [1, 128], strides = [1, 1]} : vector<2x128xf32> to vector<1x128xf32>
    %38 = vector.extract_strided_slice %32 {offsets = [1, 0], sizes = [1, 128], strides = [1, 1]} : vector<2x128xf32> to vector<1x128xf32>
    %39 = tpu.concatenate %37, %36, %38, %36 in 0 : vector<1x128xf32>, vector<15x128xf32>, vector<1x128xf32>, vector<15x128xf32> -> vector<32x128xf32>
    %40 = arith.truncf %39 : vector<32x128xf32> to vector<32x128xbf16>
    %cst_15 = arith.constant dense<0.000000e+00> : vector<32x384xf32>
    %41 = tpu.matmul %40, %3, %cst_15 {dimension_numbers = #tpu.dot_dimension_numbers<[1], [0], [0], [1], [0, 0, 1, 1], [], []>} : vector<32x128xbf16>, vector<128x384xbf16>, vector<32x384xf32> -> vector<32x384xf32>
    %42 = vector.extract_strided_slice %41 {offsets = [0, 0], sizes = [32, 128], strides = [1, 1]} : vector<32x384xf32> to vector<32x128xf32>
    %43 = arith.truncf %42 : vector<32x128xf32> to vector<32x128xbf16>
    %44 = vector.extract_strided_slice %41 {offsets = [0, 128], sizes = [32, 128], strides = [1, 1]} : vector<32x384xf32> to vector<32x128xf32>
    %45 = arith.truncf %44 : vector<32x128xf32> to vector<32x128xbf16>
    %46 = vector.extract_strided_slice %41 {offsets = [0, 256], sizes = [32, 128], strides = [1, 1]} : vector<32x384xf32> to vector<32x128xf32>
    %47 = arith.truncf %46 : vector<32x128xf32> to vector<32x128xbf16>
    %cst_16 = arith.constant dense<0.000000e+00> : vector<32x32xf32>
    %48 = tpu.matmul %43, %45, %cst_16 {dimension_numbers = #tpu.dot_dimension_numbers<[1], [1], [0], [0], [0, 0, 1, 0], [], []>} : vector<32x128xbf16>, vector<32x128xbf16>, vector<32x32xf32> -> vector<32x32xf32>
    %c0_17 = arith.constant 0 : index
    %c0_18 = arith.constant 0 : index
    %49 = vector.load %arg3[%c0_17, %c0_18] : memref<32x32xf32, #tpu.memory_space<vmem>>, vector<32x32xf32>
    %50 = arith.addf %48, %49 : vector<32x32xf32>
    %cst_19 = arith.constant dense<0xFF800000> : vector<32xf32>
    %51 = vector.multi_reduction <maximumf>, %50, %cst_19 [1] : vector<32x32xf32> to vector<32xf32>
    %52 = vector.shape_cast %51 : vector<32xf32> to vector<32x1xf32>
    %53 = vector.broadcast %52 : vector<32x1xf32> to vector<32x32xf32>
    %54 = arith.subf %50, %53 : vector<32x32xf32>
    %55 = math.exp %54 : vector<32x32xf32>
    %cst_20 = arith.constant dense<0.000000e+00> : vector<32xf32>
    %56 = vector.multi_reduction <add>, %55, %cst_20 [1] : vector<32x32xf32> to vector<32xf32>
    %57 = vector.shape_cast %56 : vector<32xf32> to vector<32x1xf32>
    %58 = tpu.reciprocal %57 {approx = true} : vector<32x1xf32> -> vector<32x1xf32>
    %59 = vector.broadcast %58 : vector<32x1xf32> to vector<32x32xf32>
    %60 = arith.mulf %55, %59 : vector<32x32xf32>
    %61 = arith.truncf %60 : vector<32x32xf32> to vector<32x32xbf16>
    %cst_21 = arith.constant dense<0.000000e+00> : vector<32x128xf32>
    %62 = tpu.matmul %61, %47, %cst_21 {dimension_numbers = #tpu.dot_dimension_numbers<[1], [0], [0], [1], [0, 0, 1, 1], [], []>} : vector<32x32xbf16>, vector<32x128xbf16>, vector<32x128xf32> -> vector<32x128xf32>
    %63 = arith.truncf %62 : vector<32x128xf32> to vector<32x128xbf16>
    %cst_22 = arith.constant dense<0.000000e+00> : vector<32x128xf32>
    %64 = tpu.matmul %63, %4, %cst_22 {dimension_numbers = #tpu.dot_dimension_numbers<[1], [0], [0], [1], [0, 0, 1, 1], [], []>} : vector<32x128xbf16>, vector<128x128xbf16>, vector<32x128xf32> -> vector<32x128xf32>
    %65 = arith.addf %64, %39 : vector<32x128xf32>
    %cst_23 = arith.constant dense<0.000000e+00> : vector<32xf32>
    %66 = vector.multi_reduction <add>, %65, %cst_23 [1] : vector<32x128xf32> to vector<32xf32>
    %67 = vector.shape_cast %66 : vector<32xf32> to vector<32x1xf32>
    %cst_24 = arith.constant 1.280000e+02 : f32
    %68 = vector.broadcast %cst_24 : f32 to vector<32x1xf32>
    %69 = arith.divf %67, %68 : vector<32x1xf32>
    %70 = vector.broadcast %69 : vector<32x1xf32> to vector<32x128xf32>
    %71 = arith.subf %65, %70 : vector<32x128xf32>
    %72 = vector.broadcast %69 : vector<32x1xf32> to vector<32x128xf32>
    %73 = arith.subf %65, %72 : vector<32x128xf32>
    %74 = arith.mulf %71, %73 : vector<32x128xf32>
    %cst_25 = arith.constant dense<0.000000e+00> : vector<32xf32>
    %75 = vector.multi_reduction <add>, %74, %cst_25 [1] : vector<32x128xf32> to vector<32xf32>
    %76 = vector.shape_cast %75 : vector<32xf32> to vector<32x1xf32>
    %cst_26 = arith.constant 1.280000e+02 : f32
    %77 = vector.broadcast %cst_26 : f32 to vector<32x1xf32>
    %78 = arith.divf %76, %77 : vector<32x1xf32>
    %79 = vector.broadcast %69 : vector<32x1xf32> to vector<32x128xf32>
    %80 = arith.subf %65, %79 : vector<32x128xf32>
    %cst_27 = arith.constant 9.99999997E-7 : f32
    %81 = vector.broadcast %cst_27 : f32 to vector<32x1xf32>
    %82 = arith.addf %78, %81 : vector<32x1xf32>
    %83 = math.rsqrt %82 : vector<32x1xf32>
    %84 = vector.broadcast %83 : vector<32x1xf32> to vector<32x128xf32>
    %85 = arith.mulf %80, %84 : vector<32x128xf32>
    %86 = vector.broadcast %7 : vector<1x128xf32> to vector<32x128xf32>
    %87 = arith.mulf %85, %86 : vector<32x128xf32>
    %88 = vector.broadcast %8 : vector<1x128xf32> to vector<32x128xf32>
    %89 = arith.addf %87, %88 : vector<32x128xf32>
    %90 = vector.extract_strided_slice %89 {offsets = [0, 0], sizes = [1, 128], strides = [1, 1]} : vector<32x128xf32> to vector<1x128xf32>
    %91 = vector.extract_strided_slice %89 {offsets = [16, 0], sizes = [1, 128], strides = [1, 1]} : vector<32x128xf32> to vector<1x128xf32>
    %92 = tpu.concatenate %90, %91 in 0 : vector<1x128xf32>, vector<1x128xf32> -> vector<2x128xf32>
    %c0_28 = arith.constant 0 : index
    %c0_29 = arith.constant 0 : index
    %93 = vector.load %arg4[%c0_28, %c0_29] : memref<2x128xf32, #tpu.memory_space<vmem>>, vector<2x128xf32>
    tpu.vector_store %arg4[%c0_28, %c0_29], %92 {strides = array<i32>} : memref<2x128xf32, #tpu.memory_space<vmem>>, vector<2x128xf32>,
    %94 = vector.extract_strided_slice %89 {offsets = [1, 0], sizes = [4, 128], strides = [1, 1]} : vector<32x128xf32> to vector<4x128xf32>
    %95 = vector.extract_strided_slice %89 {offsets = [5, 0], sizes = [4, 128], strides = [1, 1]} : vector<32x128xf32> to vector<4x128xf32>
    %96 = vector.extract_strided_slice %89 {offsets = [17, 0], sizes = [4, 128], strides = [1, 1]} : vector<32x128xf32> to vector<4x128xf32>
    %97 = arith.addf %94, %96 : vector<4x128xf32>
    %98 = vector.extract_strided_slice %89 {offsets = [21, 0], sizes = [4, 128], strides = [1, 1]} : vector<32x128xf32> to vector<4x128xf32>
    %99 = arith.addf %95, %98 : vector<4x128xf32>
    %cst_30 = arith.constant 5.000000e-01 : f32
    %100 = vector.broadcast %cst_30 : f32 to vector<4x128xf32>
    %101 = arith.mulf %97, %100 : vector<4x128xf32>
    %c0_31 = arith.constant 0 : index
    %c0_32 = arith.constant 0 : index
    %102 = vector.load %arg5[%c0_31, %c0_32] : memref<4x128xf32, #tpu.memory_space<vmem>>, vector<4x128xf32>
    tpu.vector_store %arg5[%c0_31, %c0_32], %101 {strides = array<i32>} : memref<4x128xf32, #tpu.memory_space<vmem>>, vector<4x128xf32>,
    %cst_33 = arith.constant 5.000000e-01 : f32
    %103 = vector.broadcast %cst_33 : f32 to vector<4x128xf32>
    %104 = arith.mulf %99, %103 : vector<4x128xf32>
    %c0_34 = arith.constant 0 : index
    %c0_35 = arith.constant 0 : index
    %105 = vector.load %arg6[%c0_34, %c0_35] : memref<4x128xf32, #tpu.memory_space<vmem>>, vector<4x128xf32>
    tpu.vector_store %arg6[%c0_34, %c0_35], %104 {strides = array<i32>} : memref<4x128xf32, #tpu.memory_space<vmem>>, vector<4x128xf32>,
    return
  }
}

</mosaic_0001>

<bundles_post_ra>
// kernel: proof_net_forward.1
= control target key start
LH: loop header
LB: loop body
LE: loop exit
PB: predicated region body
PF: predicated region fallthrough
CT: control target
= control target key end

     0   :  { %12 = vsyncpa [#allocation3], 0  ;;  %s1579_s0 = inlined_call_operand.vmem [shape: f32[16,128], index: 0, kind: input, shape index: {}]   ;;  %s1580_s1 = inlined_call_operand.vmem [shape: bf16[128,768], index: 1, kind: input, shape index: {}]   ;;  %s1581_s2 = inlined_call_operand.vmem [shape: f32[4,128], index: 2, kind: input, shape index: {}]   ;;  %s1582_s3 = inlined_call_operand.vmem [shape: f32[32,32], index: 3, kind: input, shape index: {}]   ;;  %s1583_s4 = inlined_call_operand.hbm [shape: f32[2,128], index: 4, kind: output, shape index: {0}]   ;;  %s1584_s5 = inlined_call_operand.hbm [shape: f32[4,128], index: 5, kind: output, shape index: {1}]   ;;  %s1585_s6 = inlined_call_operand.hbm [shape: f32[4,128], index: 6, kind: output, shape index: {2}]  }
   0x1   :  { %v855_v0 = vld [vmem:[%s1580_s1 + $0x150] sm:$0xf]  ;;  %v1006_v1 = vld [vmem:[%s1580_s1 + $0x164] sm:$0xf0]  ;;  %v1005_v2 = vld [vmem:[%s1580_s1 + $0x154] sm:$0xf] }
   0x2   :  { %v856_v3 = vor.u32 %v1006_v1, %v855_v0  ;;  %v857_v4 = vld [vmem:[%s1580_s1 + $0x168] sm:$0xf0]  ;;  %v847_v5 = vld [vmem:[%s1580_s1 + $0x120] sm:$0xf]  ;;  %v1004_v6 = vld [vmem:[%s1580_s1 + $0x134] sm:$0xf0] }
   0x3   :  { %v860_v7 = vor.u32 %v1005_v2, %v857_v4  ;;  %v1003_v8 = vld [vmem:[%s1580_s1 + $0x124] sm:$0xf]  ;;  %v849_v9 = vld [vmem:[%s1580_s1 + $0x138] sm:$0xf0]  ;;  %v848_v10 = vor.u32 %v1004_v6, %v847_v5  ;;  %v839_v12 = vld [vmem:[%s1580_s1 + $0xf0] sm:$0xf] }
   0x4   :  { %174 = vmatpush.bf16.msra.mxu0 %v856_v3  ;;  %v852_v11 = vor.u32 %v1003_v8, %v849_v9  ;;  %v1002_v13 = vld [vmem:[%s1580_s1 + $0x104] sm:$0xf0]  ;;  %v1001_v14 = vld [vmem:[%s1580_s1 + $0xf4] sm:$0xf]  ;;  %v841_v15 = vld [vmem:[%s1580_s1 + $0x108] sm:$0xf0] }
   0x5   :  { %187 = vmatpush.bf16.msra.mxu1 %v860_v7  ;;  %v840_v16 = vor.u32 %v1002_v13, %v839_v12  ;;  %v844_v17 = vor.u32 %v1001_v14, %v841_v15  ;;  %v831_v18 = vld [vmem:[%s1580_s1 + $0xc0] sm:$0xf]  ;;  %v1000_v19 = vld [vmem:[%s1580_s1 + $0xd4] sm:$0xf0]  ;;  %v999_v20 = vld [vmem:[%s1580_s1 + $0xc4] sm:$0xf] }
   0x6   :  { %v833_v21 = vld [vmem:[%s1580_s1 + $0xd8] sm:$0xf0]  ;;  %v832_v22 = vor.u32 %v1000_v19, %v831_v18  ;;  %v823_v23 = vld [vmem:[%s1580_s1 + $0x90] sm:$0xf]  ;;  %v998_v25 = vld [vmem:[%s1580_s1 + $0xa4] sm:$0xf0] }
   0x7   :  { %v836_v24 = vor.u32 %v999_v20, %v833_v21 }
   0x8   :  { %175 = vmatpush.bf16.msra.mxu0 %v848_v10 }
   0x9   :  { %188 = vmatpush.bf16.msra.mxu1 %v852_v11 }
   0xc   :  { %176 = vmatpush.bf16.msra.mxu0 %v840_v16 }
   0xd   :  { %189 = vmatpush.bf16.msra.mxu1 %v844_v17 }
   0xe   :  { %13 = vsyncpa [#allocation5], 0  ;;  %v997_v26 = vld [vmem:[%s1580_s1 + $0x94] sm:$0xf]  ;;  %v825_v27 = vld [vmem:[%s1580_s1 + $0xa8] sm:$0xf0]  ;;  %v824_v28 = vor.u32 %v998_v25, %v823_v23 }
   0xf   :  { %v828_v29 = vor.u32 %v997_v26, %v825_v27  ;;  %v815_v30 = vld [vmem:[%s1580_s1 + $0x60] sm:$0xf]  ;;  %v996_v31 = vld [vmem:[%s1580_s1 + $0x74] sm:$0xf0]  ;;  %v995_v32 = vld [vmem:[%s1580_s1 + $0x64] sm:$0xf] }
  0x10   :  { %177 = vmatpush.bf16.msra.mxu0 %v832_v22  ;;  %v817_v33 = vld [vmem:[%s1580_s1 + $0x78] sm:$0xf0]  ;;  %v816_v34 = vor.u32 %v996_v31, %v815_v30  ;;  %v807_v36 = vld [vmem:[%s1580_s1 + $0x30] sm:$0xf]  ;;  %v994_v37 = vld [vmem:[%s1580_s1 + $0x44] sm:$0xf0] }
  0x11   :  { %190 = vmatpush.bf16.msra.mxu1 %v836_v24  ;;  %v820_v35 = vor.u32 %v995_v32, %v817_v33  ;;  %v993_v38 = vld [vmem:[%s1580_s1 + $0x34] sm:$0xf]  ;;  %v809_v39 = vld [vmem:[%s1580_s1 + $0x48] sm:$0xf0]  ;;  %v808_v40 = vor.u32 %v994_v37, %v807_v36  ;;  %v799_v42 = vld [vmem:[%s1580_s1] sm:$0xf] }
  0x12   :  { %v812_v41 = vor.u32 %v993_v38, %v809_v39  ;;  %v992_v43 = vld [vmem:[%s1580_s1 + $0x14] sm:$0xf0]  ;;  %v991_v44 = vld [vmem:[%s1580_s1 + $0x4] sm:$0xf]  ;;  %v801_v45 = vld [vmem:[%s1580_s1 + $0x18] sm:$0xf0] }
  0x13   :  { %v800_v46 = vor.u32 %v992_v43, %v799_v42  ;;  %v23_v47 = vld [vmem:[%s1579_s0] sm:$0xff]  ;;  %v24_v48 = vld [vmem:[%s1579_s0 + $0x8] sm:$0xff]  ;;  %v804_v49 = vor.u32 %v991_v44, %v801_v45  ;;  %vm207_vm0 = vcmask 1045504   ;;  %vm225_vm1 = vcmask 1047558   ;;  %v947_v4 = vld [vmem:[%s1580_s1 + $0x158] sm:$0xf] }
  0x14   :  { %178 = vmatpush.bf16.msra.mxu0 %v824_v28  ;;  %v25_v50 = vpack.c.bf16 %v24_v48, %v23_v47  ;;  %v267_v51 = vrot.slane %v24_v48, 2  ;;  %v1043_v53 = vld [vmem:[%s1581_s2] ss:$0 sm:$0xff]  ;;  %v1044_v54 = vld [vmem:[%s1581_s2 + $0x1] ss:$0 sm:$0xff]  ;;  %vm229_vm2 = vcmask 1041408  }
  0x15   :  { %191 = vmatpush.bf16.msra.mxu1 %v828_v29  ;;  %v1029_v5 = vld [vmem:[%s1580_s1 + $0x16c] sm:$0xf0]  ;;  %v1028_v6 = vld [vmem:[%s1580_s1 + $0x15c] sm:$0xf]  ;;  %v949_v8 = vld [vmem:[%s1580_s1 + $0x170] sm:$0xf0] }
  0x16   :  { %v1296_v52 = vsel %vm207_vm0, %v267_v51, 0.0  ;;  %v948_v7 = vor.u32 %v1029_v5, %v947_v4  ;;  %v955_v9 = vld [vmem:[%s1580_s1 + $0x160] sm:$0xf]  ;;  %v1030_v10 = vld [vmem:[%s1580_s1 + $0x174] sm:$0xf0]  ;;  %v952_v11 = vor.u32 %v1028_v6, %v949_v8  ;;  %vm269_vm12 = vcmask 1043456  }
  0x17   :  { %v956_v12 = vor.u32 %v1030_v10, %v955_v9  ;;  %v935_v13 = vld [vmem:[%s1580_s1 + $0x128] sm:$0xf]  ;;  %v1026_v14 = vld [vmem:[%s1580_s1 + $0x13c] sm:$0xf0]  ;;  %v1025_v15 = vld [vmem:[%s1580_s1 + $0x12c] sm:$0xf] }
  0x18   :  { %179 = vmatpush.bf16.msra.mxu0 %v816_v34  ;;  %414 = vmatpush.bf16.msra.mxu2 %v948_v7  ;;  %v936_v16 = vor.u32 %v1026_v14, %v935_v13  ;;  %v937_v17 = vld [vmem:[%s1580_s1 + $0x140] sm:$0xf0]  ;;  %v943_v18 = vld [vmem:[%s1580_s1 + $0x130] sm:$0xf]  ;;  %v1027_v19 = vld [vmem:[%s1580_s1 + $0x144] sm:$0xf0] }
  0x19   :  { %192 = vmatpush.bf16.msra.mxu1 %v820_v35  ;;  %433 = vmatpush.bf16.msra.mxu3 %v952_v11  ;;  %v940_v20 = vor.u32 %v1025_v15, %v937_v17  ;;  %v944_v21 = vor.u32 %v1027_v19, %v943_v18  ;;  %v923_v22 = vld [vmem:[%s1580_s1 + $0xf8] sm:$0xf]  ;;  %v1023_v23 = vld [vmem:[%s1580_s1 + $0x10c] sm:$0xf0]  ;;  %v1022_v24 = vld [vmem:[%s1580_s1 + $0xfc] sm:$0xf] }
  0x1a   :  { %v924_v25 = vor.u32 %v1023_v23, %v923_v22  ;;  %v925_v26 = vld [vmem:[%s1580_s1 + $0x110] sm:$0xf0]  ;;  %v931_v27 = vld [vmem:[%s1580_s1 + $0x100] sm:$0xf]  ;;  %v1024_v28 = vld [vmem:[%s1580_s1 + $0x114] sm:$0xf0] }
  0x1b   :  { %v928_v29 = vor.u32 %v1022_v24, %v925_v26  ;;  %v932_v30 = vor.u32 %v1024_v28, %v931_v27  ;;  %v911_v31 = vld [vmem:[%s1580_s1 + $0xc8] sm:$0xf]  ;;  %v1020_v32 = vld [vmem:[%s1580_s1 + $0xdc] sm:$0xf0]  ;;  %v1019_v33 = vld [vmem:[%s1580_s1 + $0xcc] sm:$0xf] }
  0x1c   :  { %180 = vmatpush.bf16.msra.mxu0 %v808_v40  ;;  %415 = vmatpush.bf16.msra.mxu2 %v936_v16  ;;  %v912_v34 = vor.u32 %v1020_v32, %v911_v31  ;;  %v913_v35 = vld [vmem:[%s1580_s1 + $0xe0] sm:$0xf0]  ;;  %v919_v36 = vld [vmem:[%s1580_s1 + $0xd0] sm:$0xf]  ;;  %v1021_v37 = vld [vmem:[%s1580_s1 + $0xe4] sm:$0xf0] }
  0x1d   :  { %193 = vmatpush.bf16.msra.mxu1 %v812_v41  ;;  %434 = vmatpush.bf16.msra.mxu3 %v940_v20  ;;  %v916_v38 = vor.u32 %v1019_v33, %v913_v35  ;;  %v920_v39 = vor.u32 %v1021_v37, %v919_v36  ;;  %v899_v40 = vld [vmem:[%s1580_s1 + $0x98] sm:$0xf]  ;;  %v1017_v41 = vld [vmem:[%s1580_s1 + $0xac] sm:$0xf0]  ;;  %v1016_v42 = vld [vmem:[%s1580_s1 + $0x9c] sm:$0xf] }
  0x1e   :  { %v900_v43 = vor.u32 %v1017_v41, %v899_v40  ;;  %v901_v44 = vld [vmem:[%s1580_s1 + $0xb0] sm:$0xf0]  ;;  %v907_v45 = vld [vmem:[%s1580_s1 + $0xa0] sm:$0xf]  ;;  %v1013_v51 = vld [vmem:[%s1580_s1 + $0x6c] sm:$0xf] }
  0x1f   :  { %v904_v47 = vor.u32 %v1016_v42, %v901_v44  ;;  %v883_v4 = vld [vmem:[%s1580_s1 + $0x40] sm:$0xf]  ;;  %v1012_v5 = vld [vmem:[%s1580_s1 + $0x54] sm:$0xf0]  ;;  %v863_v10 = vld [vmem:[%s1580_s1 + $0x8] sm:$0xf] }
  0x20   :  { %181 = vmatpush.bf16.msra.mxu0 %v800_v46  ;;  %416 = vmatpush.bf16.msra.mxu2 %v924_v25  ;;  %v1018_v46 = vld [vmem:[%s1580_s1 + $0xb4] sm:$0xf0]  ;;  %v884_v9 = vor.u32 %v1012_v5, %v883_v4  ;;  %v1008_v11 = vld [vmem:[%s1580_s1 + $0x1c] sm:$0xf0]  ;;  %v1007_v14 = vld [vmem:[%s1580_s1 + $0xc] sm:$0xf] }
  0x21   :  { %194 = vmatpush.bf16.msra.mxu1 %v804_v49  ;;  %435 = vmatpush.bf16.msra.mxu3 %v928_v29  ;;  %v908_v48 = vor.u32 %v1018_v46, %v907_v45  ;;  %v887_v49 = vld [vmem:[%s1580_s1 + $0x68] sm:$0xf]  ;;  %v864_v13 = vor.u32 %v1008_v11, %v863_v10  ;;  %v865_v15 = vld [vmem:[%s1580_s1 + $0x20] sm:$0xf0]  ;;  %v871_v17 = vld [vmem:[%s1580_s1 + $0x10] sm:$0xf] }
  0x22   :  { %v868_v16 = vor.u32 %v1007_v14, %v865_v15  ;;  %v1009_v18 = vld [vmem:[%s1580_s1 + $0x24] sm:$0xf0]  ;;  %vm274_vm13 = vcmask 1040384   ;;  %vm500_vm14 = vcmask 261120   ;;  %s1156_s8 = smov [#allocation2]   ;;  %s757_s12 = sshll.u32 %s1583_s4, 4  ;;  %s758_s12 = int_to_ptr.hbm [resolvable:$true] %s757_s12 }
  0x23   :  { %182 = vmatmul.bf16.vlgmr.msra.gmra.mxu0 %v25_v50  ;;  %v872_v19 = vor.u32 %v1009_v18, %v871_v17  ;;  %v478_v17 = vld [vmem:[%s1582_s3 + $0x8] sm:$0xff]  ;;  %s755_s9 = sshll.u32 %s1156_s8, 4  ;;  %s1157_s13 = smov [#allocation4]   ;;  %s756_s9 = int_to_ptr.vmem [resolvable:$true] %s755_s9 }
  0x24   :  { %195 = vmatmul.bf16.vlgmr.msra.gmra.mxu1 %v25_v50  ;;  %452 = vmatpush.bf16.msrb.mxu0 %v956_v12  ;;  %v1014_v50 = vld [vmem:[%s1580_s1 + $0x7c] sm:$0xf0]  ;;  %s766_s14 = sshll.u32 %s1157_s13, 4  ;;  %s768_s16 = sshll.u32 %s1584_s5, 4  ;;  %s767_s14 = int_to_ptr.vmem [resolvable:$true] %s766_s14  ;;  %s769_s16 = int_to_ptr.hbm [resolvable:$true] %s768_s16 }
  0x25   :  { %417 = vmatpush.bf16.msra.mxu2 %v912_v34  ;;  %436 = vmatpush.bf16.msra.mxu3 %v916_v38  ;;  %s1158_s4 = smov [#allocation6]   ;;  %s779_s19 = sshll.u32 %s1585_s6, 4  ;;  %s780_s19 = int_to_ptr.hbm [resolvable:$true] %s779_s19 }
  0x26   :  { %s777_s5 = sshll.u32 %s1158_s4, 4  ;;  %s778_s5 = int_to_ptr.vmem [resolvable:$true] %s777_s5 }
  0x28   :  { %453 = vmatpush.bf16.msrb.mxu0 %v944_v21 }
  0x29   :  { %418 = vmatpush.bf16.msra.mxu2 %v900_v43  ;;  %437 = vmatpush.bf16.msra.mxu3 %v904_v47 }
  0x2c   :  { %454 = vmatpush.bf16.msrb.mxu0 %v932_v30 }
  0x30   :  { %455 = vmatpush.bf16.msrb.mxu0 %v920_v39 }
  0x34   :  { %456 = vmatpush.bf16.msrb.mxu0 %v908_v48 }
  0xa0   :  { %v183_v55 = vpop.f32.mrf.mxu0 }
  0xa1   :  { %v1304_v56 = vadd.f32 %v1043_v53, %v183_v55  ;;  %v196_v57 = vpop.f32.mrf.mxu1  ;;  %v888_v53 = vor.u32 %v1014_v50, %v887_v49  ;;  %v895_v55 = vld [vmem:[%s1580_s1 + $0x70] sm:$0xf]  ;;  %v276_v49 = vrot.slane %v1296_v52, 7 }
  0xa2   :  { %v1306_v58 = vadd.f32 %v1044_v54, %v196_v57  ;;  %v1015_v57 = vld [vmem:[%s1580_s1 + $0x84] sm:$0xf0] }
  0xa3   :  { %v206_v59 = vmul.f32 %v1304_v56, %v1304_v56  ;;  %419 = vmatpush.bf16.msra.mxu2 %v888_v53 }
  0xa4   :  { %v223_v60 = vmul.f32 %v1306_v58, %v1306_v58 }
  0xa5   :  { %v208_v61 = vsel %vm207_vm0, %v206_v59, 0.0 }
  0xa6   :  { %v226_v62 = vsel %vm225_vm1, %v223_v60, 0.0  ;;  %209 = vadd.xlane.f32.xlu1 %v208_v61  ;;  %v896_v60 = vor.u32 %v1015_v57, %v895_v55  ;;  %v875_v61 = vld [vmem:[%s1580_s1 + $0x38] sm:$0xf] }
  0xa7   :  { %227 = vadd.xlane.f32.xlu0 %v226_v62  ;;  %v1011_v62 = vld [vmem:[%s1580_s1 + $0x4c] sm:$0xf0] }
  0xa8   :  { %v185_v63 = vpop.f32.mrf.mxu0  ;;  %457 = vmatpush.bf16.msrb.mxu0 %v896_v60 }
  0xa9   :  { %v198_v0 = vpop.f32.mrf.mxu1  ;;  %v1010_v63 = vld [vmem:[%s1580_s1 + $0x3c] sm:$0xf] }
  0xaa   :  { %v1312_v1 = vadd.f32 %v1044_v54, %v198_v0  ;;  %v889_v54 = vld [vmem:[%s1580_s1 + $0x80] sm:$0xf0] }
  0xab   :  { %v892_v59 = vor.u32 %v1013_v51, %v889_v54 }
  0xac   :  { %v224_v2 = vmul.f32 %v1312_v1, %v1312_v1  ;;  %458 = vmatpush.bf16.msrb.mxu0 %v884_v9 }
  0xad   :  { %438 = vmatpush.bf16.msra.mxu3 %v892_v59 }
  0xae   :  { %v230_v3 = vsel %vm229_vm2, %v224_v2, 0.0  ;;  %v876_v2 = vor.u32 %v1011_v62, %v875_v61 }
  0xaf   :  { %231 = vadd.xlane.f32.xlu0 %v230_v3  ;;  %v877_v3 = vld [vmem:[%s1580_s1 + $0x50] sm:$0xf0] }
  0xb0   :  { %v880_v8 = vor.u32 %v1010_v63, %v877_v3  ;;  %420 = vmatpush.bf16.msra.mxu2 %v876_v2  ;;  %459 = vmatpush.bf16.msrb.mxu0 %v872_v19 }
  0xb2   :  { %439 = vmatpush.bf16.msra.mxu3 %v880_v8 }
  0xb4   :  { %421 = vmatpush.bf16.msra.mxu2 %v864_v13  ;;  %v477_v13 = vld [vmem:[%s1582_s3] sm:$0xff] }
  0xb6   :  { %440 = vmatpush.bf16.msra.mxu3 %v868_v16 }
 0x119   :  { %v210_v0 = vpop.xlane.xlu1 %209 }
 0x11a   :  { %v228_v6 = vpop.xlane.xlu0 %227  ;;  %v211_v7 = vmax.f32 %v210_v0, 1e-24 }
 0x11b   :  { %v233_v12 = vmax.f32 %v228_v6, 1e-24 }
 0x11c   :  { %1047 = vrsqrt.f32 %v211_v7  ;;  %vm218_vm4 = vweird.f32 %v211_v7 }
 0x11d   :  { %1049 = vrsqrt.f32 %v233_v12  ;;  %vm241_vm6 = vweird.f32 %v233_v12 }
 0x122   :  { %v1048_v20 = vpop.eup %1047  ;;  %v232_v21 = vpop.xlane.xlu0 %231 }
 0x123   :  { %v1050_v22 = vpop.eup %1049  ;;  %v213_v23 = vmul.f32 %v1048_v20, %v211_v7  ;;  %v234_v24 = vmax.f32 %v232_v21, 1e-24  ;;  %vm219_vm5 = vweird.f32 %v1048_v20  ;;  %v479_v21 = vld [vmem:[%s1582_s3 + $0x10] sm:$0xff] }
 0x124   :  { %v236_v25 = vmul.f32 %v1050_v22, %v233_v12  ;;  %vm242_vm3 = vweird.f32 %v1050_v22  ;;  %vm220_vm8 = vmor %vm218_vm4, %vm219_vm5 }
 0x125   :  { %v214_v26 = vmul.f32 %v1048_v20, %v213_v23  ;;  %1051 = vrsqrt.f32 %v234_v24  ;;  %vm243_vm7 = vmor %vm241_vm6, %vm242_vm3  ;;  %vm251_vm10 = vweird.f32 %v234_v24 }
 0x126   :  { %v237_v27 = vmul.f32 %v1050_v22, %v236_v25  ;;  %v480_v25 = vld [vmem:[%s1582_s3 + $0x18] sm:$0xff] }
 0x127   :  { %v215_v28 = vmul.f32 0.5, %v214_v26 }
 0x128   :  { %v238_v29 = vmul.f32 0.5, %v237_v27 }
 0x129   :  { %v216_v32 = vsub.f32 1.5, %v215_v28 }
 0x12a   :  { %v239_v30 = vsub.f32 1.5, %v238_v29 }
 0x12b   :  { %v1052_v31 = vpop.eup %1051  ;;  %v217_v36 = vmul.f32 %v1048_v20, %v216_v32 }
 0x12c   :  { %v246_v33 = vmul.f32 %v1052_v31, %v234_v24  ;;  %v240_v34 = vmul.f32 %v1050_v22, %v239_v30  ;;  %vm252_vm9 = vweird.f32 %v1052_v31 }
 0x12d   :  { %v221_v40 = vsel %vm220_vm8, %v1048_v20, %v217_v36  ;;  %vm253_vm11 = vmor %vm251_vm10, %vm252_vm9 }
 0x12e   :  { %v247_v35 = vmul.f32 %v1052_v31, %v246_v33  ;;  %v244_v38 = vsel %vm243_vm7, %v1050_v22, %v240_v34  ;;  %v222_v43 = vmul.f32 %v221_v40, %v1304_v56 }
 0x12f   :  { %v255_v42 = vmul.f32 %v244_v38, %v1306_v58 }
 0x130   :  { %v248_v37 = vmul.f32 0.5, %v247_v35  ;;  %v264_v48 = vrot.slane %v222_v43, 6 }
 0x131   :  { %v259_v46 = vrot.slane %v255_v42, 6 }
 0x132   :  { %v249_v39 = vsub.f32 1.5, %v248_v37 }
 0x134   :  { %v250_v41 = vmul.f32 %v1052_v31, %v249_v39 }
 0x136   :  { %v254_v44 = vsel %vm253_vm11, %v1052_v31, %v250_v41 }
 0x137   :  { %v256_v45 = vmul.f32 %v254_v44, %v1312_v1  ;;  %v280_v1 = vrot.slane %v222_v43, 1 }
 0x139   :  { %v260_v47 = vrot.slane %v256_v45, 6 }
 0x13b   :  { %v261_v50 = vsel %vm229_vm2, %v259_v46, %v260_v47 }
 0x13c   :  { %v270_v51 = vsel %vm269_vm12, %v261_v50, %v264_v48  ;;  %v989_v50 = vld [vmem:[%s1580_s1 + $0x164] sm:$0xf] }
 0x13d   :  { %v275_v53 = vrot.slane %v270_v51, 7  ;;  %v1038_v51 = vld [vmem:[%s1580_s1 + $0x178] sm:$0xf0] }
 0x13f   :  { %v1467_v54 = vsel %vm274_vm13, %v275_v53, %v276_v49  ;;  %v1470_v58 = vsel %vm274_vm13, %v222_v43, %v275_v53  ;;  %v1475_v52 = vsel %vm274_vm13, %v280_v1, %v275_v53  ;;  %v985_v53 = vld [vmem:[%s1580_s1 + $0x134] sm:$0xf]  ;;  %v1037_v1 = vld [vmem:[%s1580_s1 + $0x148] sm:$0xf0] }
 0x140   :  { %v284_v56 = vpack.c.bf16 %v1467_v54, %v1470_v58  ;;  %v285_v55 = vpack.c.bf16 %v1467_v54, %v1475_v52 }
 0x142   :  { %422 = vmatmul.bf16.vlgmr.msra.gmra.mxu2 %v284_v56  ;;  %441 = vmatmul.bf16.vlgmr.msra.gmra.mxu3 %v284_v56 }
 0x143   :  { %460 = vmatmul.bf16.vlgmr.msrb.gmra.mxu0 %v284_v56  ;;  %v990_v56 = vor.u32 %v1038_v51, %v989_v50 }
 0x145   :  { %622 = vmatpush.bf16.msrb.mxu3 %v990_v56 }
 0x152   :  { %427 = vmatmul.bf16.gmra.mxu2 %v285_v55  ;;  %446 = vmatmul.bf16.gmra.mxu3 %v285_v55 }
 0x153   :  { %465 = vmatmul.bf16.gmra.mxu0 %v285_v55  ;;  %v986_v55 = vor.u32 %v1037_v1, %v985_v53 }
 0x155   :  { %623 = vmatpush.bf16.msrb.mxu3 %v986_v55 }
 0x1c0   :  { %v461_v57 = vpop.f32.mrf.mxu0 }
 0x1c5   :  { %v442_v59 = vpop.f32.mrf.mxu3  ;;  %v423_v3 = vpop.f32.mrf.mxu2 }
 0x1c8   :  { %v463_v60 = vpop.f32.mrf.mxu0 }
 0x1c9   :  { %v475_v4 = vpack.c.bf16 %v463_v60, %v461_v57  ;;  %v1036_v60 = vld [vmem:[%s1580_s1 + $0x118] sm:$0xf0] }
 0x1cd   :  { %v444_v61 = vpop.f32.mrf.mxu3  ;;  %v425_v7 = vpop.f32.mrf.mxu2 }
 0x1ce   :  { %v473_v8 = vpack.c.bf16 %v444_v61, %v442_v59  ;;  %v471_v9 = vpack.c.bf16 %v425_v7, %v423_v3  ;;  %v981_v59 = vld [vmem:[%s1580_s1 + $0x104] sm:$0xf]  ;;  %v1034_v7 = vld [vmem:[%s1580_s1 + $0xb8] sm:$0xf0] }
 0x1cf   :  { %v982_v61 = vor.u32 %v1036_v60, %v981_v59 }
 0x1d0   :  { %v466_v62 = vpop.f32.mrf.mxu0 }
 0x1d1   :  { %624 = vmatpush.bf16.msrb.mxu3 %v982_v61 }
 0x1d5   :  { %v447_v63 = vpop.f32.mrf.mxu3  ;;  %v428_v10 = vpop.f32.mrf.mxu2 }
 0x1d8   :  { %v468_v0 = vpop.f32.mrf.mxu0 }
 0x1d9   :  { %v476_v2 = vpack.c.bf16 %v468_v0, %v466_v62  ;;  %v977_v62 = vld [vmem:[%s1580_s1 + $0xd4] sm:$0xf] }
 0x1db   :  { %559 = vmatpush.bf16.msrb.mxu2 %v476_v2 }
 0x1dd   :  { %v449_v5 = vpop.f32.mrf.mxu3  ;;  %v430_v11 = vpop.f32.mrf.mxu2 }
 0x1de   :  { %v474_v6 = vpack.c.bf16 %v449_v5, %v447_v63  ;;  %v472_v12 = vpack.c.bf16 %v430_v11, %v428_v10  ;;  %v1035_v63 = vld [vmem:[%s1580_s1 + $0xe8] sm:$0xf0] }
 0x1df   :  { %560 = vmatpush.bf16.msrb.mxu2 %v475_v4  ;;  %v978_v3 = vor.u32 %v1035_v63, %v977_v62 }
 0x1e0   :  { %487 = vmatpush.bf16.xpose.msrb.mxu1 %v474_v6  ;;  %v973_v6 = vld [vmem:[%s1580_s1 + $0xa4] sm:$0xf] }
 0x1e1   :  { %625 = vmatpush.bf16.msrb.mxu3 %v978_v3 }
 0x1e8   :  { %488 = vmatpush.bf16.xpose.msrb.mxu1 %v473_v8 }
 0x1ef   :  { %489 = vmatmul.bf16.vlgmr.msrb.gmra.mxu1 %v471_v9  ;;  %v974_v9 = vor.u32 %v1034_v7, %v973_v6 }
 0x1f1   :  { %626 = vmatpush.bf16.msrb.mxu3 %v974_v9 }
 0x1ff   :  { %494 = vmatmul.bf16.gmra.mxu1 %v472_v12 }
 0x26c   :  { %v490_v14 = vpop.f32.mrf.mxu1 }
 0x26d   :  { %v491_v15 = vadd.f32 %v490_v14, %v477_v13 }
 0x26f   :  { %v501_v16 = vsel %vm500_vm14, %v491_v15, -inf }
 0x270   :  { %502 = vmax.xlane.f32.xlu1 %v501_v16 }
 0x274   :  { %v492_v18 = vpop.f32.mrf.mxu1 }
 0x275   :  { %v493_v19 = vadd.f32 %v492_v18, %v478_v17  ;;  %v969_v17 = vld [vmem:[%s1580_s1 + $0x74] sm:$0xf]  ;;  %v1033_v18 = vld [vmem:[%s1580_s1 + $0x88] sm:$0xf0] }
 0x277   :  { %v504_v20 = vsel %vm500_vm14, %v493_v19, -inf }
 0x278   :  { %505 = vmax.xlane.f32.xlu2 %v504_v20  ;;  %v965_v20 = vld [vmem:[%s1580_s1 + $0x44] sm:$0xf] }
 0x27c   :  { %v495_v22 = vpop.f32.mrf.mxu1 }
 0x27d   :  { %v496_v23 = vadd.f32 %v495_v22, %v479_v21  ;;  %v1032_v21 = vld [vmem:[%s1580_s1 + $0x58] sm:$0xf0] }
 0x27e   :  { %v966_v22 = vor.u32 %v1032_v21, %v965_v20 }
 0x27f   :  { %v507_v24 = vsel %vm500_vm14, %v496_v23, -inf }
 0x280   :  { %508 = vmax.xlane.f32.xlu2 %v507_v24  ;;  %v1031_v24 = vld [vmem:[%s1580_s1 + $0x28] sm:$0xf0] }
 0x284   :  { %v497_v26 = vpop.f32.mrf.mxu1 }
 0x285   :  { %v498_v27 = vadd.f32 %v497_v26, %v480_v25 }
 0x287   :  { %v510_v28 = vsel %vm500_vm14, %v498_v27, -inf }
 0x288   :  { %511 = vmax.xlane.f32.xlu0 %v510_v28 }
 0x2e3   :  { %v503_v29 = vpop.xlane.xlu1 %502 }
 0x2e4   :  { %v513_v30 = vsub.f32 %v491_v15, %v503_v29 }
 0x2e6   :  { %v517_v31 = vmul.f32 1.442695, %v513_v30 }
 0x2e8   :  { %1053 = vpow2.f32 %v517_v31 }
 0x2eb   :  { %v506_v32 = vpop.xlane.xlu2 %505 }
 0x2ec   :  { %v514_v33 = vsub.f32 %v493_v19, %v506_v32  ;;  %v970_v19 = vor.u32 %v1033_v18, %v969_v17 }
 0x2ee   :  { %v1054_v34 = vpop.eup %1053  ;;  %v519_v35 = vmul.f32 1.442695, %v514_v33  ;;  %627 = vmatpush.bf16.msrb.mxu3 %v970_v19 }
 0x2ef   :  { %v525_v36 = vsel %vm500_vm14, %v1054_v34, 0.0 }
 0x2f0   :  { %1055 = vpow2.f32 %v519_v35  ;;  %526 = vadd.xlane.f32.xlu1 %v525_v36 }
 0x2f2   :  { %628 = vmatpush.bf16.msrb.mxu3 %v966_v22 }
 0x2f3   :  { %v509_v37 = vpop.xlane.xlu2 %508 }
 0x2f4   :  { %v515_v38 = vsub.f32 %v496_v23, %v509_v37  ;;  %v961_v23 = vld [vmem:[%s1580_s1 + $0x14] sm:$0xf] }
 0x2f5   :  { %v962_v25 = vor.u32 %v1031_v24, %v961_v23 }
 0x2f6   :  { %v1056_v39 = vpop.eup %1055  ;;  %v521_v40 = vmul.f32 1.442695, %v515_v38 }
 0x2f7   :  { %v528_v41 = vsel %vm500_vm14, %v1056_v39, 0.0  ;;  %629 = vmatpush.bf16.msrb.mxu3 %v962_v25 }
 0x2f8   :  { %1057 = vpow2.f32 %v521_v40  ;;  %529 = vadd.xlane.f32.xlu2 %v528_v41  ;;  %v1155_v40 = vmov 128.0  }
 0x2fb   :  { %v512_v42 = vpop.xlane.xlu0 %511 }
 0x2fc   :  { %v516_v43 = vsub.f32 %v498_v27, %v512_v42 }
 0x2fe   :  { %v1058_v44 = vpop.eup %1057  ;;  %v523_v45 = vmul.f32 1.442695, %v516_v43 }
 0x2ff   :  { %v531_v46 = vsel %vm500_vm14, %v1058_v44, 0.0 }
 0x300   :  { %1059 = vpow2.f32 %v523_v45  ;;  %532 = vadd.xlane.f32.xlu0 %v531_v46 }
 0x306   :  { %v1060_v47 = vpop.eup %1059 }
 0x307   :  { %v534_v48 = vsel %vm500_vm14, %v1060_v47, 0.0 }
 0x308   :  { %535 = vadd.xlane.f32.xlu1 %v534_v48 }
 0x363   :  { %v527_v49 = vpop.xlane.xlu1 %526 }
 0x364   :  { %1061 = vrcp.f32 %v527_v49 }
 0x36a   :  { %v1062_v0 = vpop.eup %1061 }
 0x36b   :  { %v530_v57 = vpop.xlane.xlu2 %529  ;;  %v541_v4 = vmul.f32 %v1062_v0, %v1054_v34 }
 0x36c   :  { %1063 = vrcp.f32 %v530_v57 }
 0x372   :  { %v1064_v2 = vpop.eup %1063 }
 0x373   :  { %v542_v5 = vmul.f32 %v1064_v2, %v1056_v39  ;;  %v533_v10 = vpop.xlane.xlu0 %532 }
 0x374   :  { %1065 = vrcp.f32 %v533_v10 }
 0x375   :  { %v545_v8 = vpack.c.bf16 %v542_v5, %v541_v4 }
 0x377   :  { %957 = vmatmul.msk.bf16.vlgmr.msrb.gmra.mxu2 %vm500_vm14, %v545_v8 }
 0x37a   :  { %v1066_v12 = vpop.eup %1065 }
 0x37b   :  { %v536_v11 = vpop.xlane.xlu1 %535  ;;  %v543_v14 = vmul.f32 %v1066_v12, %v1058_v44 }
 0x37c   :  { %1067 = vrcp.f32 %v536_v11 }
 0x37d   :  { %1069 = vrcp.f32 %v1155_v40 }
 0x382   :  { %v1068_v13 = vpop.eup %1067 }
 0x383   :  { %v544_v15 = vmul.f32 %v1068_v13, %v1060_v47  ;;  %v1070_v41 = vpop.eup %1069 }
 0x384   :  { %v650_v42 = vmul.f32 128.0, %v1070_v41  ;;  %vm654_vm15 = vweird.f32 %v1070_v41 }
 0x385   :  { %v546_v16 = vpack.c.bf16 %v544_v15, %v543_v14 }
 0x386   :  { %v651_v43 = vsub.f32 1.0, %v650_v42 }
 0x387   :  { %958 = vmatmul.msk.bf16.gmra.mxu2 %vm500_vm14, %v546_v16 }
 0x388   :  { %v652_v44 = vmul.f32 %v1070_v41, %v651_v43 }
 0x3fa   :  { %v562_v26 = vpop.f32.mrf.mxu2 }
 0x402   :  { %v564_v27 = vpop.f32.mrf.mxu2 }
 0x403   :  { %v572_v28 = vpack.c.bf16 %v564_v27, %v562_v26 }
 0x405   :  { %630 = vmatmul.bf16.vlgmr.msrb.gmra.mxu3 %v572_v28 }
 0x40a   :  { %v567_v29 = vpop.f32.mrf.mxu2 }
 0x412   :  { %v569_v30 = vpop.f32.mrf.mxu2 }
 0x413   :  { %v573_v31 = vpack.c.bf16 %v569_v30, %v567_v29  ;;  %v1045_v30 = vld [vmem:[%s1581_s2 + $0x2] ss:$0 sm:$0xff] }
 0x415   :  { %635 = vmatmul.bf16.gmra.mxu3 %v573_v31 }
 0x488   :  { %v631_v32 = vpop.f32.mrf.mxu3 }
 0x489   :  { %v632_v33 = vadd.f32 %v631_v32, %v1470_v58  ;;  %v653_v58 = vadd.f32 %v1070_v41, %v652_v44 }
 0x48b   :  { %641 = vadd.xlane.f32.xlu2 %v632_v33  ;;  %v655_v45 = vsel %vm654_vm15, %v1070_v41, %v653_v58 }
 0x490   :  { %v633_v34 = vpop.f32.mrf.mxu3 }
 0x491   :  { %v634_v35 = vadd.f32 %v633_v34, %v1467_v54 }
 0x493   :  { %643 = vadd.xlane.f32.xlu1 %v634_v35 }
 0x498   :  { %v636_v36 = vpop.f32.mrf.mxu3 }
 0x499   :  { %v637_v37 = vadd.f32 %v636_v36, %v1475_v52 }
 0x49b   :  { %645 = vadd.xlane.f32.xlu0 %v637_v37 }
 0x4a0   :  { %v638_v38 = vpop.f32.mrf.mxu3 }
 0x4a1   :  { %v639_v39 = vadd.f32 %v638_v38, %v1467_v54  ;;  %v1046_v38 = vld [vmem:[%s1581_s2 + $0x3] ss:$0 sm:$0xff] }
 0x4a3   :  { %647 = vadd.xlane.f32.xlu2 %v639_v39 }
 0x4fe   :  { %v642_v46 = vpop.xlane.xlu2 %641 }
 0x4ff   :  { %v656_v47 = vmul.f32 %v655_v45, %v642_v46 }
 0x501   :  { %v660_v48 = vsub.f32 %v632_v33, %v656_v47 }
 0x503   :  { %v664_v49 = vmul.f32 %v660_v48, %v660_v48 }
 0x505   :  { %668 = vadd.xlane.f32.xlu0 %v664_v49 }
 0x506   :  { %v644_v52 = vpop.xlane.xlu1 %643 }
 0x507   :  { %v657_v50 = vmul.f32 %v655_v45, %v644_v52 }
 0x509   :  { %v1553_v51 = vsub.f32 %v634_v35, %v657_v50 }
 0x50b   :  { %v665_v54 = vmul.f32 %v1553_v51, %v1553_v51 }
 0x50d   :  { %670 = vadd.xlane.f32.xlu2 %v665_v54 }
 0x50e   :  { %v646_v53 = vpop.xlane.xlu0 %645 }
 0x50f   :  { %v658_v56 = vmul.f32 %v655_v45, %v646_v53 }
 0x511   :  { %v662_v1 = vsub.f32 %v637_v37, %v658_v56 }
 0x513   :  { %v666_v55 = vmul.f32 %v662_v1, %v662_v1 }
 0x515   :  { %672 = vadd.xlane.f32.xlu1 %v666_v55 }
 0x516   :  { %v648_v57 = vpop.xlane.xlu2 %647 }
 0x517   :  { %v659_v59 = vmul.f32 %v655_v45, %v648_v57 }
 0x519   :  { %v1557_v60 = vsub.f32 %v639_v39, %v659_v59 }
 0x51b   :  { %v667_v61 = vmul.f32 %v1557_v60, %v1557_v60 }
 0x51d   :  { %674 = vadd.xlane.f32.xlu0 %v667_v61 }
 0x578   :  { %v669_v62 = vpop.xlane.xlu0 %668 }
 0x579   :  { %v676_v63 = vmul.f32 %v669_v62, %v655_v45 }
 0x57b   :  { %v680_v0 = vadd.f32 1e-06, %v676_v63 }
 0x57d   :  { %1071 = vrsqrt.f32 %v680_v0  ;;  %vm690_vm1 = vweird.f32 %v680_v0 }
 0x580   :  { %v671_v2 = vpop.xlane.xlu2 %670 }
 0x581   :  { %v677_v3 = vmul.f32 %v671_v2, %v655_v45 }
 0x583   :  { %v1072_v4 = vpop.eup %1071  ;;  %v681_v5 = vadd.f32 1e-06, %v677_v3 }
 0x584   :  { %v685_v6 = vmul.f32 %v1072_v4, %v680_v0  ;;  %vm691_vm0 = vweird.f32 %v1072_v4 }
 0x585   :  { %1073 = vrsqrt.f32 %v681_v5  ;;  %vm692_vm2 = vmor %vm690_vm1, %vm691_vm0  ;;  %vm700_vm7 = vweird.f32 %v681_v5 }
 0x586   :  { %v686_v7 = vmul.f32 %v1072_v4, %v685_v6 }
 0x588   :  { %v673_v8 = vpop.xlane.xlu1 %672  ;;  %v687_v12 = vmul.f32 0.5, %v686_v7 }
 0x589   :  { %v678_v9 = vmul.f32 %v673_v8, %v655_v45 }
 0x58a   :  { %v688_v14 = vsub.f32 1.5, %v687_v12 }
 0x58b   :  { %v1074_v10 = vpop.eup %1073  ;;  %v682_v11 = vadd.f32 1e-06, %v678_v9 }
 0x58c   :  { %v695_v13 = vmul.f32 %v1074_v10, %v681_v5  ;;  %v689_v20 = vmul.f32 %v1072_v4, %v688_v14  ;;  %vm701_vm4 = vweird.f32 %v1074_v10 }
 0x58d   :  { %1075 = vrsqrt.f32 %v682_v11  ;;  %vm710_vm5 = vweird.f32 %v682_v11  ;;  %vm702_vm8 = vmor %vm700_vm7, %vm701_vm4 }
 0x58e   :  { %v696_v15 = vmul.f32 %v1074_v10, %v695_v13  ;;  %v693_v24 = vsel %vm692_vm2, %v1072_v4, %v689_v20 }
 0x58f   :  { %v724_v29 = vmul.f32 %v693_v24, %v660_v48 }
 0x590   :  { %v675_v16 = vpop.xlane.xlu0 %674  ;;  %v697_v21 = vmul.f32 0.5, %v696_v15 }
 0x591   :  { %v679_v17 = vmul.f32 %v675_v16, %v655_v45  ;;  %v729_v37 = vmul.f32 %v1045_v30, %v724_v29 }
 0x592   :  { %v698_v25 = vsub.f32 1.5, %v697_v21 }
 0x593   :  { %v1076_v18 = vpop.eup %1075  ;;  %v683_v19 = vadd.f32 1e-06, %v679_v17  ;;  %v734_v44 = vadd.f32 %v1046_v38, %v729_v37 }
 0x594   :  { %v705_v22 = vmul.f32 %v1076_v18, %v682_v11  ;;  %vm711_vm3 = vweird.f32 %v1076_v18  ;;  %v699_v31 = vmul.f32 %v1074_v10, %v698_v25 }
 0x595   :  { %1077 = vrsqrt.f32 %v683_v19  ;;  %vm712_vm6 = vmor %vm710_vm5, %vm711_vm3  ;;  %vm720_vm10 = vweird.f32 %v683_v19 }
 0x596   :  { %v706_v23 = vmul.f32 %v1076_v18, %v705_v22  ;;  %v703_v39 = vsel %vm702_vm8, %v1074_v10, %v699_v31 }
 0x597   :  { %v725_v43 = vmul.f32 %v703_v39, %v1553_v51 }
 0x598   :  { %v707_v26 = vmul.f32 0.5, %v706_v23 }
 0x599   :  { %v730_v51 = vmul.f32 %v1045_v30, %v725_v43 }
 0x59a   :  { %v708_v27 = vsub.f32 1.5, %v707_v26 }
 0x59b   :  { %v1078_v28 = vpop.eup %1077  ;;  %v735_v53 = vadd.f32 %v1046_v38, %v730_v51 }
 0x59c   :  { %v709_v32 = vmul.f32 %v1076_v18, %v708_v27  ;;  %v715_v33 = vmul.f32 %v1078_v28, %v683_v19  ;;  %vm721_vm9 = vweird.f32 %v1078_v28 }
 0x59d   :  { %vm722_vm11 = vmor %vm720_vm10, %vm721_vm9 }
 0x59e   :  { %v713_v34 = vsel %vm712_vm6, %v1076_v18, %v709_v32  ;;  %v716_v35 = vmul.f32 %v1078_v28, %v715_v33 }
 0x59f   :  { %v726_v36 = vmul.f32 %v713_v34, %v662_v1 }
 0x5a0   :  { %v717_v40 = vmul.f32 0.5, %v716_v35 }
 0x5a1   :  { %v731_v41 = vmul.f32 %v1045_v30, %v726_v36 }
 0x5a2   :  { %v718_v42 = vsub.f32 1.5, %v717_v40 }
 0x5a3   :  { %v736_v58 = vadd.f32 %v1046_v38, %v731_v41 }
 0x5a4   :  { %v719_v45 = vmul.f32 %v1078_v28, %v718_v42 }
 0x5a5   :  { %v743_v46 = vadd.f32 %v736_v58, %v734_v44  ;;  %v739_v47 = vrot.slane %v736_v58, 7 }
 0x5a6   :  { %v723_v48 = vsel %vm722_vm11, %v1078_v28, %v719_v45 }
 0x5a7   :  { %v727_v49 = vmul.f32 %v723_v48, %v1557_v60  ;;  %v745_v52 = vmul.f32 0.5, %v743_v46  ;;  %v741_v50 = vsel %vm274_vm13, %v734_v44, %v739_v47 }
 0x5a8   :  { %742 = vst [vmem:[#allocation2] sm:$0x3] %v741_v50 }
 0x5a9   :  { %746 = vst [vmem:[#allocation4 - $0x1] sm:$0x1e] %v745_v52  ;;  %760 = dma.vmem_to_hbm [thread:$0]  %s756_s9, 32, %s758_s12, [#allocation3]   ;;  %v732_v54 = vmul.f32 %v1045_v30, %v727_v49 }
 0x5aa   :  { %771 = dma.vmem_to_hbm [thread:$0]  %s767_s14, 64, %s769_s16, [#allocation5]   ;;  %748 = vst [vmem:[#allocation6 - $0x5] sm:$0xe0] %v745_v52 }
 0x5ab   :  { %v737_v56 = vadd.f32 %v1046_v38, %v732_v54 }
 0x5ad   :  { %v744_v1 = vadd.f32 %v737_v56, %v735_v53 }
 0x5af   :  { %v747_v55 = vmul.f32 0.5, %v744_v1 }
 0x5b1   :  { %749 = vst [vmem:[#allocation6 + $0x3] sm:$0x1] %v747_v55 }
 0x5b2   :  { %782 = dma.vmem_to_hbm [thread:$0]  %s778_s5, 64, %s780_s19, [#allocation5]  }
 0x5b3   :  { %1151 = dma.done.wait [#allocation3], 32  }
 0x5b4   :  { %1152 = vsyncadd [#allocation3], 4294967264 }
 0x5b5   :  { %1153 = dma.done.wait [#allocation5], 128  }
 0x5b6   :  { %1154 = vsyncadd [#allocation5], 4294967168 }
 0x5b7   :  { %795 = vsyncpa [#allocation3], 1 }
 0x5b8   :  { %796 = vsyncpa [#allocation5], 1 }

</bundles_post_ra>
